<compile_context>
chip_gen: v7x
topology: tpu7x:2x2x1
jax: 0.10.0
libtpu: 0.0.40
codegen_flags: <defaults>
</compile_context>

<pallas_src>
import jax
import jax.numpy as jnp
from jax.experimental import pallas as pl
from jax.experimental.pallas import tpu as pltpu

# Module hyper-parameters (from the PyTorch script)
ITEM_NUM = 50
EMBED_SIZE = ITEM_NUM          # 50
TAG_NUM = 5
FEAT_SIZE = TAG_NUM            # 5
H_DIM = 16
NEG_SLOPE = 0.01               # nn.LeakyReLU default negative_slope

TB_MAX = 4096                  # batch-tile rows (multiple of 8)


def _leaky_relu(x, slope=NEG_SLOPE):
    return jnp.where(x >= 0, x, slope * x)


def _round_up(x, m):
    return (x + m - 1) // m * m


def mlp_kernel(ex_ref, fx_ref,
               w1e_ref, w1f_ref, b1_ref,
               w2_ref, b2_ref,
               w3_ref, b3_ref,
               o_ref):
    # Layer 1: split matmul replaces concat([embed_x, feat_x]) @ W1.
    h1 = (jnp.dot(ex_ref[...], w1e_ref[...], preferred_element_type=jnp.float32)
          + jnp.dot(fx_ref[...], w1f_ref[...], preferred_element_type=jnp.float32)
          + b1_ref[...])
    h1 = _leaky_relu(h1)                                               # (TB, 16)

    # Layer 2
    h2 = jnp.dot(h1, w2_ref[...], preferred_element_type=jnp.float32) + b2_ref[...]
    h2 = _leaky_relu(h2)                                               # (TB, 16)

    # Layer 3 (no activation)
    h3 = jnp.dot(h2, w3_ref[...], preferred_element_type=jnp.float32) + b3_ref[...]
    o_ref[...] = h3.astype(o_ref.dtype)                                # (TB, 50)


def mlp_forward(embed_x, feat_x, params, *, tb_max=TB_MAX):
    """embed_x: (B, EMBED_SIZE), feat_x: (B, FEAT_SIZE) -> (B, EMBED_SIZE)."""
    w1, b1, w2, b2, w3, b3 = params

    # One-time, tiny split of the first-layer weight (keeps the hot path free
    # of an activation concat).
    w1e = w1[:EMBED_SIZE]            # (50, 16)
    w1f = w1[EMBED_SIZE:]            # (5, 16)

    B = embed_x.shape[0]
    tb = min(tb_max, _round_up(max(B, 1), 8))      # multiple of 8 (f32 sublane)
    b_pad = _round_up(B, tb)
    if b_pad != B:
        pad = ((0, b_pad - B), (0, 0))
        embed_x = jnp.pad(embed_x, pad)
        feat_x = jnp.pad(feat_x, pad)
    nb = b_pad // tb

    def const_spec(shape):
        # Weight/bias blocks: whole array, same block for every grid step
        # (stays VMEM-resident across the batch loop).
        return pl.BlockSpec(shape, lambda i, _n=len(shape): (0,) * _n)

    out = pl.pallas_call(
        mlp_kernel,
        out_shape=jax.ShapeDtypeStruct((b_pad, EMBED_SIZE), jnp.float32),
        grid=(nb,),
        in_specs=[
            pl.BlockSpec((tb, EMBED_SIZE), lambda i: (i, 0)),   # embed_x tile
            pl.BlockSpec((tb, FEAT_SIZE), lambda i: (i, 0)),    # feat_x tile
            const_spec(w1e.shape), const_spec(w1f.shape), const_spec(b1.shape),
            const_spec(w2.shape), const_spec(b2.shape),
            const_spec(w3.shape), const_spec(b3.shape),
        ],
        out_specs=pl.BlockSpec((tb, EMBED_SIZE), lambda i: (i, 0)),
        compiler_params=pltpu.CompilerParams(
            dimension_semantics=("parallel",)),    # megacore sharding on v7x
    )(embed_x, feat_x, w1e, w1f, b1, w2, b2, w3, b3)

    return out[:B] if b_pad != B else out


def init_params(key):
    """Deterministic init mimicking nn.Linear (uniform ±1/sqrt(fan_in)).
    Weights stored as (in, out) so the kernel does x @ W."""
    dims = [(EMBED_SIZE + FEAT_SIZE, H_DIM), (H_DIM, H_DIM), (H_DIM, EMBED_SIZE)]
    params = []
    for d_in, d_out in dims:
        key, kw, kb = jax.random.split(key, 3)
        bound = 1.0 / (d_in ** 0.5)
        w = jax.random.uniform(kw, (d_in, d_out), jnp.float32, -bound, bound)
        b = jax.random.uniform(kb, (1, d_out), jnp.float32, -bound, bound)
        params += [w, b]
    return tuple(params)


def reference_forward(embed_x, feat_x, params):
    w1, b1, w2, b2, w3, b3 = params
    x = jnp.concatenate([embed_x, feat_x], axis=-1)
    h = _leaky_relu(x @ w1 + b1)
    h = _leaky_relu(h @ w2 + b2)
    return h @ w3 + b3


if __name__ == "__main__":
    key = jax.random.PRNGKey(0)
    kp, ke, kf = jax.random.split(key, 3)

    params = init_params(kp)

    # Small shapes consistent with the module: batch=2, embed=50, feat=5.
    batch = 2
    embed_x = jax.random.normal(ke, (batch, EMBED_SIZE), jnp.float32)
    feat_x = jax.random.normal(kf, (batch, FEAT_SIZE), jnp.float32)

    out = jax.block_until_ready(mlp_forward(embed_x, feat_x, params))
    ref = reference_forward(embed_x, feat_x, params)
    assert out.shape == (batch, EMBED_SIZE)
    assert jnp.allclose(out, ref, atol=1e-5, rtol=1e-5)

    # Also validate a batch that exercises multiple grid steps + a ragged tail.
    kb2, ke2, kf2 = jax.random.split(key, 3)
    big_b = 100
    ex2 = jax.random.normal(ke2, (big_b, EMBED_SIZE), jnp.float32)
    fx2 = jax.random.normal(kf2, (big_b, FEAT_SIZE), jnp.float32)
    out2 = jax.block_until_ready(mlp_forward(ex2, fx2, params, tb_max=32))
    ref2 = reference_forward(ex2, fx2, params)
    assert out2.shape == (big_b, EMBED_SIZE)
    assert jnp.allclose(out2, ref2, atol=1e-5, rtol=1e-5)

    print("KERNEL_OK")
</pallas_src>

<mosaic_0001>
module attributes {stable_mosaic.version = 11 : i64} {
  func.func @mlp_kernel(%arg0: i32, %arg1: memref<8x50xf32, #tpu.memory_space<vmem>>, %arg2: memref<8x5xf32, #tpu.memory_space<vmem>>, %arg3: memref<50x16xf32, #tpu.memory_space<vmem>>, %arg4: memref<5x16xf32, #tpu.memory_space<vmem>>, %arg5: memref<1x16xf32, #tpu.memory_space<vmem>>, %arg6: memref<16x16xf32, #tpu.memory_space<vmem>>, %arg7: memref<1x16xf32, #tpu.memory_space<vmem>>, %arg8: memref<16x50xf32, #tpu.memory_space<vmem>>, %arg9: memref<1x50xf32, #tpu.memory_space<vmem>>, %arg10: memref<8x50xf32, #tpu.memory_space<vmem>>) attributes {dimension_semantics = [#tpu.dimension_semantics<parallel>], iteration_bounds = array<i64: 1>, scalar_prefetch = 0 : i64, scratch_operands = 0 : i64, tpu.core_type = #tpu.core_type<tc>, window_params = [{transform_indices = @transform_0, window_bounds = array<i64: 8, 50>}, {transform_indices = @transform_1, window_bounds = array<i64: 8, 5>}, {pipeline_mode = #tpu.pipeline_mode<synchronous>, transform_indices = @transform_2, window_bounds = array<i64: 50, 16>}, {pipeline_mode = #tpu.pipeline_mode<synchronous>, transform_indices = @transform_3, window_bounds = array<i64: 5, 16>}, {pipeline_mode = #tpu.pipeline_mode<synchronous>, transform_indices = @transform_4, window_bounds = array<i64: 1, 16>}, {pipeline_mode = #tpu.pipeline_mode<synchronous>, transform_indices = @transform_5, window_bounds = array<i64: 16, 16>}, {pipeline_mode = #tpu.pipeline_mode<synchronous>, transform_indices = @transform_6, window_bounds = array<i64: 1, 16>}, {pipeline_mode = #tpu.pipeline_mode<synchronous>, transform_indices = @transform_7, window_bounds = array<i64: 16, 50>}, {pipeline_mode = #tpu.pipeline_mode<synchronous>, transform_indices = @transform_8, window_bounds = array<i64: 1, 50>}, {transform_indices = @transform_9, window_bounds = array<i64: 8, 50>}]} {
    %c0 = arith.constant 0 : index
    %c0_0 = arith.constant 0 : index
    %0 = vector.load %arg1[%c0, %c0_0] : memref<8x50xf32, #tpu.memory_space<vmem>>, vector<8x50xf32>
    %c0_1 = arith.constant 0 : index
    %c0_2 = arith.constant 0 : index
    %1 = vector.load %arg3[%c0_1, %c0_2] : memref<50x16xf32, #tpu.memory_space<vmem>>, vector<50x16xf32>
    %cst = arith.constant dense<0.000000e+00> : vector<8x16xf32>
    %2 = tpu.matmul %0, %1, %cst {dimension_numbers = #tpu.dot_dimension_numbers<[1], [0], [0], [1], [0, 0, 1, 1], [], []>} : vector<8x50xf32>, vector<50x16xf32>, vector<8x16xf32> -> vector<8x16xf32>
    %c0_3 = arith.constant 0 : index
    %c0_4 = arith.constant 0 : index
    %3 = vector.load %arg2[%c0_3, %c0_4] : memref<8x5xf32, #tpu.memory_space<vmem>>, vector<8x5xf32>
    %c0_5 = arith.constant 0 : index
    %c0_6 = arith.constant 0 : index
    %4 = vector.load %arg4[%c0_5, %c0_6] : memref<5x16xf32, #tpu.memory_space<vmem>>, vector<5x16xf32>
    %cst_7 = arith.constant dense<0.000000e+00> : vector<8x16xf32>
    %5 = tpu.matmul %3, %4, %cst_7 {dimension_numbers = #tpu.dot_dimension_numbers<[1], [0], [0], [1], [0, 0, 1, 1], [], []>} : vector<8x5xf32>, vector<5x16xf32>, vector<8x16xf32> -> vector<8x16xf32>
    %6 = arith.addf %2, %5 : vector<8x16xf32>
    %c0_8 = arith.constant 0 : index
    %c0_9 = arith.constant 0 : index
    %7 = vector.load %arg5[%c0_8, %c0_9] : memref<1x16xf32, #tpu.memory_space<vmem>>, vector<1x16xf32>
    %8 = vector.broadcast %7 : vector<1x16xf32> to vector<8x16xf32>
    %9 = arith.addf %6, %8 : vector<8x16xf32>
    %cst_10 = arith.constant 0.000000e+00 : f32
    %10 = vector.broadcast %cst_10 : f32 to vector<8x16xf32>
    %11 = arith.cmpf oge, %9, %10 : vector<8x16xf32>
    %cst_11 = arith.constant 0.00999999977 : f32
    %12 = vector.broadcast %cst_11 : f32 to vector<8x16xf32>
    %13 = arith.mulf %12, %9 : vector<8x16xf32>
    %14 = arith.select %11, %9, %13 : vector<8x16xi1>, vector<8x16xf32>
    %c0_12 = arith.constant 0 : index
    %c0_13 = arith.constant 0 : index
    %15 = vector.load %arg6[%c0_12, %c0_13] : memref<16x16xf32, #tpu.memory_space<vmem>>, vector<16x16xf32>
    %cst_14 = arith.constant dense<0.000000e+00> : vector<8x16xf32>
    %16 = tpu.matmul %14, %15, %cst_14 {dimension_numbers = #tpu.dot_dimension_numbers<[1], [0], [0], [1], [0, 0, 1, 1], [], []>} : vector<8x16xf32>, vector<16x16xf32>, vector<8x16xf32> -> vector<8x16xf32>
    %c0_15 = arith.constant 0 : index
    %c0_16 = arith.constant 0 : index
    %17 = vector.load %arg7[%c0_15, %c0_16] : memref<1x16xf32, #tpu.memory_space<vmem>>, vector<1x16xf32>
    %18 = vector.broadcast %17 : vector<1x16xf32> to vector<8x16xf32>
    %19 = arith.addf %16, %18 : vector<8x16xf32>
    %cst_17 = arith.constant 0.000000e+00 : f32
    %20 = vector.broadcast %cst_17 : f32 to vector<8x16xf32>
    %21 = arith.cmpf oge, %19, %20 : vector<8x16xf32>
    %cst_18 = arith.constant 0.00999999977 : f32
    %22 = vector.broadcast %cst_18 : f32 to vector<8x16xf32>
    %23 = arith.mulf %22, %19 : vector<8x16xf32>
    %24 = arith.select %21, %19, %23 : vector<8x16xi1>, vector<8x16xf32>
    %c0_19 = arith.constant 0 : index
    %c0_20 = arith.constant 0 : index
    %25 = vector.load %arg8[%c0_19, %c0_20] : memref<16x50xf32, #tpu.memory_space<vmem>>, vector<16x50xf32>
    %cst_21 = arith.constant dense<0.000000e+00> : vector<8x50xf32>
    %26 = tpu.matmul %24, %25, %cst_21 {dimension_numbers = #tpu.dot_dimension_numbers<[1], [0], [0], [1], [0, 0, 1, 1], [], []>} : vector<8x16xf32>, vector<16x50xf32>, vector<8x50xf32> -> vector<8x50xf32>
    %c0_22 = arith.constant 0 : index
    %c0_23 = arith.constant 0 : index
    %27 = vector.load %arg9[%c0_22, %c0_23] : memref<1x50xf32, #tpu.memory_space<vmem>>, vector<1x50xf32>
    %28 = vector.broadcast %27 : vector<1x50xf32> to vector<8x50xf32>
    %29 = arith.addf %26, %28 : vector<8x50xf32>
    %c0_24 = arith.constant 0 : index
    %c0_25 = arith.constant 0 : index
    %30 = vector.load %arg10[%c0_24, %c0_25] : memref<8x50xf32, #tpu.memory_space<vmem>>, vector<8x50xf32>
    tpu.vector_store %arg10[%c0_24, %c0_25], %29 {strides = array<i32>} : memref<8x50xf32, #tpu.memory_space<vmem>>, vector<8x50xf32>,
    return
  }
  func.func @transform_0(%arg0: i32) -> (i32, i32) {
    %c0_i32 = arith.constant 0 : i32
    %c0_i32_0 = arith.constant 0 : i32
    return %arg0, %c0_i32 : i32, i32
  }
  func.func @transform_1(%arg0: i32) -> (i32, i32) {
    %c0_i32 = arith.constant 0 : i32
    %c0_i32_0 = arith.constant 0 : i32
    return %arg0, %c0_i32 : i32, i32
  }
  func.func @transform_2(%arg0: i32) -> (i32, i32) {
    %c0_i32 = arith.constant 0 : i32
    %c0_i32_0 = arith.constant 0 : i32
    %c0_i32_1 = arith.constant 0 : i32
    return %c0_i32, %c0_i32_0 : i32, i32
  }
  func.func @transform_3(%arg0: i32) -> (i32, i32) {
    %c0_i32 = arith.constant 0 : i32
    %c0_i32_0 = arith.constant 0 : i32
    %c0_i32_1 = arith.constant 0 : i32
    return %c0_i32, %c0_i32_0 : i32, i32
  }
  func.func @transform_4(%arg0: i32) -> (i32, i32) {
    %c0_i32 = arith.constant 0 : i32
    %c0_i32_0 = arith.constant 0 : i32
    %c0_i32_1 = arith.constant 0 : i32
    return %c0_i32, %c0_i32_0 : i32, i32
  }
  func.func @transform_5(%arg0: i32) -> (i32, i32) {
    %c0_i32 = arith.constant 0 : i32
    %c0_i32_0 = arith.constant 0 : i32
    %c0_i32_1 = arith.constant 0 : i32
    return %c0_i32, %c0_i32_0 : i32, i32
  }
  func.func @transform_6(%arg0: i32) -> (i32, i32) {
    %c0_i32 = arith.constant 0 : i32
    %c0_i32_0 = arith.constant 0 : i32
    %c0_i32_1 = arith.constant 0 : i32
    return %c0_i32, %c0_i32_0 : i32, i32
  }
  func.func @transform_7(%arg0: i32) -> (i32, i32) {
    %c0_i32 = arith.constant 0 : i32
    %c0_i32_0 = arith.constant 0 : i32
    %c0_i32_1 = arith.constant 0 : i32
    return %c0_i32, %c0_i32_0 : i32, i32
  }
  func.func @transform_8(%arg0: i32) -> (i32, i32) {
    %c0_i32 = arith.constant 0 : i32
    %c0_i32_0 = arith.constant 0 : i32
    %c0_i32_1 = arith.constant 0 : i32
    return %c0_i32, %c0_i32_0 : i32, i32
  }
  func.func @transform_9(%arg0: i32) -> (i32, i32) {
    %c0_i32 = arith.constant 0 : i32
    %c0_i32_0 = arith.constant 0 : i32
    return %arg0, %c0_i32 : i32, i32
  }
}

</mosaic_0001>

<bundles_post_ra>
// kernel: tpu_custom_call.1
= control target key start
LH: loop header
LB: loop body
LE: loop exit
PB: predicated region body
PF: predicated region fallthrough
CT: control target
= control target key end

     0   :  { %vm47_vm0 = vcmask 1044480   ;;  %v497_v3 = vmov 0.0|0.0   ;;  %v498_v6 = vmov 0.0   ;;  %vm43_vm1 = vcmask 39936   ;;  %s620_s0 = inlined_call_operand.vmem [shape: f32[8,50], index: 0, kind: input, shape index: {}]   ;;  %s621_s1 = inlined_call_operand.vmem [shape: f32[8,5], index: 1, kind: input, shape index: {}]   ;;  %s622_s2 = inlined_call_operand.vmem [shape: f32[50,16], index: 2, kind: input, shape index: {}]   ;;  %s623_s3 = inlined_call_operand.vmem [shape: f32[5,16], index: 3, kind: input, shape index: {}]   ;;  %s624_s4 = inlined_call_operand.vmem [shape: f32[1,16], index: 4, kind: input, shape index: {}]   ;;  %s625_s5 = inlined_call_operand.vmem [shape: f32[16,16], index: 5, kind: input, shape index: {}]   ;;  %s626_s6 = inlined_call_operand.vmem [shape: f32[1,16], index: 6, kind: input, shape index: {}]   ;;  %s627_s7 = inlined_call_operand.vmem [shape: f32[16,50], index: 7, kind: input, shape index: {}]   ;;  %s628_s8 = inlined_call_operand.vmem [shape: f32[1,50], index: 8, kind: input, shape index: {}]   ;;  %s629_s9 = inlined_call_operand.hbm [shape: f32[8,50], index: 9, kind: output, shape index: {}]  }
   0x1   :  { %v34_v0 = vld [vmem:[%s622_s2] sm:$0xff]  ;;  %v35_v1 = vld [vmem:[%s622_s2 + $0x8] sm:$0xff]  ;;  %v36_v2 = vld [vmem:[%s622_s2 + $0x10] sm:$0xff]  ;;  %454 = vmatprep.subr.bf16.mxu1 %v497_v3  ;;  %418 = vmatprep.subr.mxu0 %v498_v6  ;;  %vm499_vm2 = vmmov 0  }
   0x2   :  { %v455_v4 = vpack.c.bf16 %v35_v1, %v34_v0  ;;  %v37_v5 = vld [vmem:[%s622_s2 + $0x18] sm:$0xff]  ;;  %v42_v7 = vld [vmem:[%s623_s3] sm:$0x1f]  ;;  %420 = vmatprep.mubr.msk.f32.mxu0 %vm499_vm2, %v498_v6  ;;  %437 = vmatprep.mubr.msk.f32.mxu1 %vm499_vm2, %v498_v6 }
   0x3   :  { %v41_v8 = vld [vmem:[%s621_s1] sm:$0xff]  ;;  %v458_v9 = vpack.c.bf16 %v37_v5, %v36_v2  ;;  %419 = vmatpush3.msk.msra.mxu0 %vm47_vm0, %v42_v7 }
   0x4   :  { %456 = vmatpush3.bf16.msra.mxu1 %v455_v4 }
   0x5   :  { %14 = vsyncpa [#allocation3], 0  ;;  %457 = vmatprep.subr.bf16.mxu1 %v497_v3  ;;  %v38_v10 = vld [vmem:[%s622_s2 + $0x20] sm:$0xff]  ;;  %v39_v11 = vld [vmem:[%s622_s2 + $0x28] sm:$0xff]  ;;  %421 = vmatmul.mubr.msk.f32.vlgmr.msra.gmra.mrb[0].mxu0 %vm43_vm1, %v41_v8  ;;  %vm125_vm3 = vcmask 1041408   ;;  %vm121_vm4 = vcmask 408576  }
   0x6   :  { %463 = vmatprep.subr.bf16.mxu0 %v497_v3  ;;  %444 = vmatprep.mubr.msk.f32.mxu0 %vm499_vm2, %v498_v6  ;;  %v461_v12 = vpack.c.bf16 %v39_v11, %v38_v10  ;;  %v40_v13 = vld [vmem:[%s622_s2 + $0x30] sm:$0x3]  ;;  %v33_v14 = vld [vmem:[%s620_s0] sm:$0xff]  ;;  %v211_v16 = vld [vmem:[%s625_s5 + $0x8] sm:$0xff]  ;;  %vm219_vm6 = vcmask 130048   ;;  %s500_s16 = smov [#allocation2]  }
   0x7   :  { %v210_v15 = vld [vmem:[%s625_s5] sm:$0xff]  ;;  %v297_v28 = vld [vmem:[%s627_s7 + $0x8] sm:$0xff]  ;;  %s385_s17 = sshll.u32 %s500_s16, 4  ;;  %s386_s17 = int_to_ptr.vmem [resolvable:$true] %s385_s17 }
   0x8   :  { %459 = vmatpush3.bf16.msra.mxu1 %v458_v9  ;;  %v464_v17 = vpack.c.bf16 %v211_v16, %v210_v15  ;;  %v397_v21 = vld [vmem:[%s624_s4] ss:$0 sm:$0xff]  ;;  %p478_p1 = scmp.lt.s32.totalorder %s386_s17, %s386_s17 }
   0x9   :  { %460 = vmatprep.subr.bf16.mxu1 %v497_v3  ;;  %v296_v27 = vld [vmem:[%s627_s7] sm:$0xff] }
   0xa   :  { %465 = vmatpush3.bf16.msra.mxu0 %v464_v17  ;;  %v467_v29 = vpack.c.bf16 %v297_v28, %v296_v27  ;;  %v398_v30 = vld [vmem:[%s626_s6] ss:$0 sm:$0xff]  ;;  %s473_s6 = scalar_lea.vmem %s386_s17, 128 }
   0xb   :  { %466 = vmatprep.subr.bf16.mxu0 %v497_v3  ;;  %v400_v36 = vld [vmem:[%s628_s8] ss:$0 sm:$0xff]  ;;  %p474_p0 = scmp.ne.s32.totalorder %s386_s17, %s473_s6  ;;  %p479_p2 = scmp.lt.s32.totalorder %s473_s6, %s473_s6 }
   0xc   :  { %462 = vmatpush3.bf16.msra.mxu1 %v461_v12 }
   0xd   :  { %435 = vmatprep.subr.mxu1 %v498_v6  ;;  %p480_p3 = por %p479_p2, %p478_p1 }
   0xf   :  { %p481_p4 = pnand %p480_p3, %p474_p0 }
  0x10   :  { %436 = vmatpush3.msk.msra.mxu1 %vm125_vm3, %v40_v13 }
  0x11   :  { %438 = vmatmul.mubr.msk.f32.vlgmr.msra.gmra.mrb[0].mxu1 %vm121_vm4, %v33_v14 }
  0xd8   :  { %v117_v18 = vpop.f32.mrb[0].mxu0 }
  0xd9   :  { %v422_v19 = vpop.f32.mrb[1].mxu0 }
  0xe4   :  { %v195_v20 = vpop.f32.mrb[0].mxu1 }
  0xe5   :  { %v196_v22 = vadd.f32 %v195_v20, %v117_v18  ;;  %v439_v23 = vpop.f32.mrb[1].mxu1 }
  0xe7   :  { %v206_v24 = vadd.f32 %v397_v21, %v196_v22 }
  0xe9   :  { %vm207_vm5 = vcmp.ge.f32.partialorder %v206_v24, 0.0  ;;  %v208_v25 = vmul.f32 0.01, %v206_v24 }
  0xeb   :  { %v209_v26 = vsel %vm207_vm5, %v206_v24, %v208_v25 }
  0xec   :  { %445 = vmatmul.mubr.msk.f32.vlgmr.msra.gmra.mrb[2].mxu0 %vm219_vm6, %v209_v26 }
  0xed   :  { %451 = vmatprep.mubr.msk.f32.mxu0 %vm499_vm2, %v498_v6  ;;  %468 = vmatpush3.bf16.msra.mxu0 %v467_v29 }
 0x1bf   :  { %v289_v31 = vpop.f32.mrb[2].mxu0 }
 0x1c0   :  { %v290_v32 = vadd.f32 %v398_v30, %v289_v31  ;;  %v446_v33 = vpop.f32.mrb[3].mxu0 }
 0x1c2   :  { %vm293_vm7 = vcmp.ge.f32.partialorder %v290_v32, 0.0  ;;  %v294_v34 = vmul.f32 0.01, %v290_v32 }
 0x1c4   :  { %v295_v35 = vsel %vm293_vm7, %v290_v32, %v294_v34 }
 0x1c5   :  { %452 = vmatmul.mubr.msk.f32.vlgmr.msra.gmra.mrb[4].mxu0 %vm219_vm6, %v295_v35 }
 0x298   :  { %v374_v37 = vpop.f32.mrb[4].mxu0 }
 0x299   :  { %v375_v38 = vadd.f32 %v400_v36, %v374_v37  ;;  %v453_v39 = vpop.f32.mrb[5].mxu0 }
 0x29b   :  { %378 = vst.msk [vmem:[#allocation2] sm:$0xff] %vm121_vm4, %v375_v38 }
 0x29c   :  { %484 = shalt.err (!%p481_p4)
}
 0x29d   :  { %s485_s19 = scalar_lea.hbm %s629_s9, 128 }
 0x29e   :  { %p486_p5 = scmp.ne.s32.totalorder %s629_s9, %s485_s19  ;;  %p489_p6 = scmp.lt.u32.totalorder %s485_s19, %s629_s9 }
 0x2a0   :  { %p491_p7 = pnand %p489_p6, %p486_p5 }
 0x2a2   :  { %494 = shalt.err (!%p491_p7)
}
 0x2a3   :  { %388 = dma.vmem_to_hbm [thread:$0]  %s386_s17, 128, %s629_s9, [#allocation3]  }
 0x2a4   :  { %495 = dma.done.wait [#allocation3], 128  }
 0x2a5   :  { %496 = vsyncadd [#allocation3], 4294967168 }
 0x2a6   :  { %392 = vsyncpa [#allocation3], 1 }

</bundles_post_ra>
